<compile_context>
chip_gen: v5e
topology: v5e:2x2
jax: 0.10.0
libtpu: 0.0.40
codegen_flags: <defaults>
</compile_context>

<pallas_src>
import functools

import numpy as np
import jax
import jax.numpy as jnp
from jax.experimental import pallas as pl
from jax.experimental.pallas import tpu as pltpu


# --------------------------- weight preprocessing --------------------------- #

def _toeplitz(conv_w, w_in, padded, k_pad_to=0):
    """Per-kh Toeplitz matrices turning a 3x3 (pad=1) conv into row-shifted matmuls.

    T[kh] : (wcols*Cin [padded to k_pad_to], w_in*Cout).  Input lanes are (w, cin) over
    one (optionally W-padded) image row; output lanes are ordered (w % 2, w // 2, cout)
    so the 2x2 max-pool along W reduces to a max of the two contiguous lane halves.
    """
    w = np.asarray(conv_w, np.float32)            # (Cout, Cin, 3, 3)
    cout, cin = w.shape[0], w.shape[1]
    wcols = w_in + 2 if padded else w_in
    wh = w_in // 2
    k = wcols * cin
    t = np.zeros((3, max(k, k_pad_to), w_in * cout), np.float32)
    for kh in range(3):
        for wo in range(w_in):
            ob = (wo % 2) * (wh * cout) + (wo // 2) * cout
            for kw in range(3):
                wi = wo + kw if padded else wo + kw - 1
                if 0 <= wi < wcols:
                    t[kh, wi * cin:(wi + 1) * cin, ob:ob + cout] = w[:, :, kh, kw].T
    return jnp.asarray(t)


def prepare_kernel_params(params, input_dim):
    """One-time conversion of PyTorch-layout weights into kernel layout (bf16)."""
    conv1, conv2 = params["conv1"], params["conv2"]
    cin = conv1.shape[1]
    c2 = conv2.shape[0]
    # pad conv1's reduction dim (lanes of one padded image row) to a multiple of 128
    # so the x DMA is lane-dense and the bf16 matmul K dim is aligned.
    k1 = (input_dim + 2) * cin
    k1_pad = -(-k1 // 128) * 128
    t1 = _toeplitz(conv1, input_dim, padded=True, k_pad_to=k1_pad)   # (3, K1, W*C1)
    t2 = _toeplitz(conv2, input_dim // 2, padded=False)              # (3, W2*C1, W2*C2)
    h4 = w4 = input_dim // 4
    # fold PyTorch's NCHW flatten (c, h, w) into the first FC weight's row order;
    # the kernel flattens as (h, w, c).
    perm = np.zeros(h4 * w4 * c2, np.int32)
    for c in range(c2):
        for h in range(h4):
            for w in range(w4):
                perm[h * (w4 * c2) + w * c2 + c] = c * (h4 * w4) + h * w4 + w
    fcs = [jnp.asarray(w, jnp.float32).T for w in params["fc_hidden"]]
    fcs.append(jnp.asarray(params["fc_out"], jnp.float32).T)         # all stored (in, out)
    fcs[0] = fcs[0][perm, :]
    out_size = int(fcs[-1].shape[1])
    out_pad = -(-out_size // 128) * 128
    if out_pad > out_size:                                           # lane-dense result store
        fcs[-1] = jnp.pad(fcs[-1], ((0, 0), (0, out_pad - out_size)))
    bf16 = jnp.bfloat16
    return {"t1": t1.astype(bf16), "t2": t2.astype(bf16),
            "fc": [f.astype(bf16) for f in fcs], "out_size": out_size}


# ------------------------------ fused kernel -------------------------------- #

def _fused_cnn_kernel(x_ref, t1_ref, t2_ref, *refs, H, W, C1, C2, NB):
    fc_refs, o_ref = refs[:-1], refs[-1]
    hq = H // 4                      # conv1 rows per (row mod 4) phase == final pooled rows
    M = NB * hq                      # sublane extent of every conv-stage tile
    w2 = W // 2
    half1 = w2 * C1                  # stage-1 W-pool lane half
    half2 = (w2 // 2) * C2           # stage-2 W-pool lane half
    fblk = half2                     # flattened lanes contributed per pooled row
    bf16 = jnp.bfloat16

    def mm(a, b):
        return jnp.dot(a, b, preferred_element_type=jnp.float32)

    # Six row-phase operands, each (M, K1) bf16 with rows ordered (i, b):
    #   q[s][i*NB + b] = spatially padded input row (4*i + s) of local image b.
    q = [x_ref[0, s] for s in range(6)]

    # ---- conv1: a[s][i*NB+b] = conv1 output row (4*i+s) of image b, shape (M, W*C1).
    # Grouped by RHS so each Toeplitz block t1[k] is pushed to the MXU once and
    # reused across the four LHS phase groups.
    a = [None] * 4
    for k in range(3):
        wk = t1_ref[k]                                   # (K1, W*C1) bf16
        for s in range(4):
            p = mm(q[s + k], wk)
            a[s] = p if a[s] is None else a[s] + p

    # ---- ReLU + 2x2 max-pool (H via the mod-4 phase groups, W via lane halves) -----
    def relu_wpool(u, v, half):
        m = jnp.maximum(jnp.maximum(u, v), 0.0)
        return jnp.maximum(m[:, :half], m[:, half:])

    e2 = relu_wpool(a[0], a[1], half1).astype(bf16)      # pooled rows 2i   (M, w2*C1)
    o2 = relu_wpool(a[2], a[3], half1).astype(bf16)      # pooled rows 2i+1 (M, w2*C1)

    # ---- conv2 (grouped by RHS): same-pair taps + per-row H-boundary terms ---------
    t2a = t2_ref[0]
    bo = mm(e2, t2a)                                     # odd rows, tap on pooled row 2i
    ae = mm(o2, t2a)                                     # even rows' tap on row 2i-1
    t2b = t2_ref[1]
    be = mm(e2, t2b)                                     # even rows, tap on row 2i
    bo = bo + mm(o2, t2b)                                # odd rows, tap on row 2i+1
    t2c = t2_ref[2]
    go = mm(e2, t2c)                                     # odd rows' tap on row 2i+2
    be = be + mm(o2, t2c)                                # even rows, tap on row 2i+1

    # ---- H-boundary terms via one full-tile NB-row shift (no per-row loop) ---------
    zrow = jnp.zeros((NB, be.shape[1]), jnp.float32)
    re = be + jnp.concatenate([zrow, ae[:M - NB]], axis=0)   # even conv2 rows
    ro = bo + jnp.concatenate([go[NB:], zrow], axis=0)       # odd  conv2 rows

    # ---- ReLU + pool2 as full-tile ops; flatten folded into the first FC matmul ----
    piece = relu_wpool(re, ro, half2).astype(bf16)       # (M, fblk), rows ordered (h, b)
    act = None
    for h in range(hq):
        ph = piece[h * NB:(h + 1) * NB, :]               # (NB, fblk): pooled row h, all b
        c = mm(ph, fc_refs[0][h * fblk:(h + 1) * fblk, :])
        act = c if act is None else act + c

    n_hidden = len(fc_refs) - 1
    if n_hidden >= 1:
        act = jnp.maximum(act, 0.0)                      # first hidden ReLU
        # TODO(synk): nn.Dropout(p=0.01) treated as identity (inference mode).
        for wr in fc_refs[1:-1]:
            act = jnp.maximum(mm(act.astype(bf16), wr[...]), 0.0)
        act = mm(act.astype(bf16), fc_refs[-1][...])
    o_ref[0] = act


# --------------------------------- wrapper ---------------------------------- #

@functools.partial(jax.jit, static_argnames=("out_size", "block_batch"))
def _forward(x_nchw, t1, t2, fcs, out_size, block_batch):
    N, Cin, H, W = x_nchw.shape
    assert H == W and H % 4 == 0, "spatial dims must be multiples of 4"
    Hp = H + 2
    hq = H // 4
    K1 = t1.shape[1]                          # lane width of one padded image row
    C1 = t1.shape[2] // W
    C2 = t2.shape[2] // (W // 2)
    out_pad = fcs[-1].shape[1]

    NB = min(block_batch, N)                  # images per grid step (M = 4*NB)
    G = pl.cdiv(N, NB)
    Npad = G * NB

    # NCHW -> NHWC, zero-pad spatially, fold (W, C) into lanes (padded to K1),
    # pad the batch, cast to bf16 for the MXU.
    xp = jnp.pad(jnp.transpose(x_nchw, (0, 2, 3, 1)),
                 ((0, 0), (1, 1), (1, 1), (0, 0)))
    xp = xp.reshape(N, Hp, (W + 2) * Cin)
    xp = jnp.pad(xp, ((0, Npad - N), (0, 0), (0, K1 - (W + 2) * Cin)))
    xp = xp.astype(jnp.bfloat16)
    # Six row phases (phase s, slot i -> padded row 4*i + s), then order the rows of
    # each grid block as (i, b) so the kernel only needs static, contiguous slices.
    phases = jnp.stack([xp[:, s:s + 4 * hq:4, :] for s in range(6)], axis=1)
    xq = phases.reshape(G, NB, 6, hq, K1).transpose(0, 2, 3, 1, 4)
    xq = xq.reshape(G, 6, hq * NB, K1)

    kernel = functools.partial(_fused_cnn_kernel, H=H, W=W, C1=C1, C2=C2, NB=NB)
    out = pl.pallas_call(
        kernel,
        out_shape=jax.ShapeDtypeStruct((G, NB, out_pad), jnp.float32),
        grid=(G,),
        in_specs=[
            pl.BlockSpec((1, 6, hq * NB, K1), lambda g: (g, 0, 0, 0)),
            pl.BlockSpec(t1.shape, lambda g: (0, 0, 0)),
            pl.BlockSpec(t2.shape, lambda g: (0, 0, 0)),
        ] + [pl.BlockSpec(w.shape, lambda g: (0, 0)) for w in fcs],
        out_specs=pl.BlockSpec((1, NB, out_pad), lambda g: (g, 0, 0)),
        compiler_params=pltpu.CompilerParams(
            dimension_semantics=("parallel",)),
    )(xq, t1, t2, *fcs)
    return out.reshape(Npad, out_pad)[:N, :out_size]


def cnn_nobias_forward(x_nchw, kparams, block_batch=32):
    return _forward(x_nchw, kparams["t1"], kparams["t2"], tuple(kparams["fc"]),
                    out_size=kparams["out_size"], block_batch=block_batch)


# ------------------------- parameter initialization ------------------------- #

def init_params(key, input_channels, conv_channels, input_dim,
                hidden_widths, output_size):
    """PyTorch-layout parameters (Conv2d OIHW, Linear (out, in)), bias-free."""
    keys = jax.random.split(key, 3 + len(hidden_widths))
    c0, c1 = conv_channels
    conv1 = 0.1 * jax.random.normal(keys[0], (c0, input_channels, 3, 3), jnp.float32)
    conv2 = 0.1 * jax.random.normal(keys[1], (c1, c0, 3, 3), jnp.float32)
    in_size = (input_dim // 4) ** 2 * c1
    fc_hidden = []
    for i, h in enumerate(hidden_widths):
        fc_hidden.append(0.1 * jax.random.normal(keys[2 + i], (h, in_size), jnp.float32))
        in_size = h
    fc_out = 0.1 * jax.random.normal(keys[-1], (output_size, in_size), jnp.float32)
    return {"conv1": conv1, "conv2": conv2,
            "fc_hidden": fc_hidden, "fc_out": fc_out}


# -------------------------------- reference --------------------------------- #

def reference_forward(x_nchw, params):
    def conv(x, w):
        return jax.lax.conv_general_dilated(
            x, w, (1, 1), "SAME",
            dimension_numbers=("NCHW", "OIHW", "NCHW"))

    def pool(x):
        return jax.lax.reduce_window(
            x, -jnp.inf, jax.lax.max, (1, 1, 2, 2), (1, 1, 2, 2), "VALID")

    x = pool(jax.nn.relu(conv(x_nchw, params["conv1"])))
    x = pool(jax.nn.relu(conv(x, params["conv2"])))
    x = x.reshape(x.shape[0], -1)
    for w in params["fc_hidden"]:
        x = jax.nn.relu(x @ w.T)
    return x @ params["fc_out"].T


# ----------------------------------- main ------------------------------------ #

if __name__ == "__main__":
    key = jax.random.PRNGKey(0)
    k_x, k_p = jax.random.split(key)

    # CNN_nobias(input_dim=16, output_size=10, input_channels=4,
    #            conv_channels=(8, 8), hidden_widths=(32,))
    N, Cin, Hdim = 2, 4, 16
    conv_channels = (8, 8)
    hidden_widths = (32,)
    output_size = 10

    x = jax.random.normal(k_x, (N, Cin, Hdim, Hdim), jnp.float32)
    params = init_params(k_p, Cin, conv_channels, Hdim, hidden_widths, output_size)
    kparams = prepare_kernel_params(params, Hdim)

    out = cnn_nobias_forward(x, kparams)
    out = jax.block_until_ready(out)

    ref = reference_forward(x, params)
    assert out.shape == (N, output_size), out.shape
    # bf16 MXU operands with f32 accumulation -> loosened tolerance vs f32 reference.
    assert jnp.allclose(out, ref, atol=4e-2, rtol=4e-2), "mismatch vs JAX reference"

    print("KERNEL_OK")
</pallas_src>

<mosaic_0001>
module attributes {stable_mosaic.version = 11 : i64} {
  func.func @_fused_cnn_kernel(%arg0: i32, %arg1: memref<1x6x8x128xbf16, #tpu.memory_space<vmem>>, %arg2: memref<3x128x128xbf16, #tpu.memory_space<vmem>>, %arg3: memref<3x64x64xbf16, #tpu.memory_space<vmem>>, %arg4: memref<128x32xbf16, #tpu.memory_space<vmem>>, %arg5: memref<32x128xbf16, #tpu.memory_space<vmem>>, %arg6: memref<1x2x128xf32, #tpu.memory_space<vmem>>) attributes {dimension_semantics = [#tpu.dimension_semantics<parallel>], iteration_bounds = array<i64: 1>, scalar_prefetch = 0 : i64, scratch_operands = 0 : i64, tpu.core_type = #tpu.core_type<tc>, window_params = [{transform_indices = @transform_0, window_bounds = array<i64: 1, 6, 8, 128>}, {pipeline_mode = #tpu.pipeline_mode<synchronous>, transform_indices = @transform_1, window_bounds = array<i64: 3, 128, 128>}, {pipeline_mode = #tpu.pipeline_mode<synchronous>, transform_indices = @transform_2, window_bounds = array<i64: 3, 64, 64>}, {pipeline_mode = #tpu.pipeline_mode<synchronous>, transform_indices = @transform_3, window_bounds = array<i64: 128, 32>}, {pipeline_mode = #tpu.pipeline_mode<synchronous>, transform_indices = @transform_4, window_bounds = array<i64: 32, 128>}, {transform_indices = @transform_5, window_bounds = array<i64: 1, 2, 128>}]} {
    %c0 = arith.constant 0 : index
    %c0_0 = arith.constant 0 : index
    %c0_1 = arith.constant 0 : index
    %c0_2 = arith.constant 0 : index
    %0 = vector.load %arg1[%c0, %c0_0, %c0_1, %c0_2] : memref<1x6x8x128xbf16, #tpu.memory_space<vmem>>, vector<1x1x8x128xbf16>
    %1 = vector.shape_cast %0 : vector<1x1x8x128xbf16> to vector<8x128xbf16>
    %c0_3 = arith.constant 0 : index
    %c1 = arith.constant 1 : index
    %c0_4 = arith.constant 0 : index
    %c0_5 = arith.constant 0 : index
    %2 = vector.load %arg1[%c0_3, %c1, %c0_4, %c0_5] : memref<1x6x8x128xbf16, #tpu.memory_space<vmem>>, vector<1x1x8x128xbf16>
    %3 = vector.shape_cast %2 : vector<1x1x8x128xbf16> to vector<8x128xbf16>
    %c0_6 = arith.constant 0 : index
    %c2 = arith.constant 2 : index
    %c0_7 = arith.constant 0 : index
    %c0_8 = arith.constant 0 : index
    %4 = vector.load %arg1[%c0_6, %c2, %c0_7, %c0_8] : memref<1x6x8x128xbf16, #tpu.memory_space<vmem>>, vector<1x1x8x128xbf16>
    %5 = vector.shape_cast %4 : vector<1x1x8x128xbf16> to vector<8x128xbf16>
    %c0_9 = arith.constant 0 : index
    %c3 = arith.constant 3 : index
    %c0_10 = arith.constant 0 : index
    %c0_11 = arith.constant 0 : index
    %6 = vector.load %arg1[%c0_9, %c3, %c0_10, %c0_11] : memref<1x6x8x128xbf16, #tpu.memory_space<vmem>>, vector<1x1x8x128xbf16>
    %7 = vector.shape_cast %6 : vector<1x1x8x128xbf16> to vector<8x128xbf16>
    %c0_12 = arith.constant 0 : index
    %c4 = arith.constant 4 : index
    %c0_13 = arith.constant 0 : index
    %c0_14 = arith.constant 0 : index
    %8 = vector.load %arg1[%c0_12, %c4, %c0_13, %c0_14] : memref<1x6x8x128xbf16, #tpu.memory_space<vmem>>, vector<1x1x8x128xbf16>
    %9 = vector.shape_cast %8 : vector<1x1x8x128xbf16> to vector<8x128xbf16>
    %c0_15 = arith.constant 0 : index
    %c5 = arith.constant 5 : index
    %c0_16 = arith.constant 0 : index
    %c0_17 = arith.constant 0 : index
    %10 = vector.load %arg1[%c0_15, %c5, %c0_16, %c0_17] : memref<1x6x8x128xbf16, #tpu.memory_space<vmem>>, vector<1x1x8x128xbf16>
    %11 = vector.shape_cast %10 : vector<1x1x8x128xbf16> to vector<8x128xbf16>
    %c0_18 = arith.constant 0 : index
    %c0_19 = arith.constant 0 : index
    %c0_20 = arith.constant 0 : index
    %12 = vector.load %arg2[%c0_18, %c0_19, %c0_20] : memref<3x128x128xbf16, #tpu.memory_space<vmem>>, vector<1x128x128xbf16>
    %13 = vector.shape_cast %12 : vector<1x128x128xbf16> to vector<128x128xbf16>
    %cst = arith.constant dense<0.000000e+00> : vector<8x128xf32>
    %14 = tpu.matmul %1, %13, %cst {dimension_numbers = #tpu.dot_dimension_numbers<[1], [0], [0], [1], [0, 0, 1, 1], [], []>} : vector<8x128xbf16>, vector<128x128xbf16>, vector<8x128xf32> -> vector<8x128xf32>
    %cst_21 = arith.constant dense<0.000000e+00> : vector<8x128xf32>
    %15 = tpu.matmul %3, %13, %cst_21 {dimension_numbers = #tpu.dot_dimension_numbers<[1], [0], [0], [1], [0, 0, 1, 1], [], []>} : vector<8x128xbf16>, vector<128x128xbf16>, vector<8x128xf32> -> vector<8x128xf32>
    %cst_22 = arith.constant dense<0.000000e+00> : vector<8x128xf32>
    %16 = tpu.matmul %5, %13, %cst_22 {dimension_numbers = #tpu.dot_dimension_numbers<[1], [0], [0], [1], [0, 0, 1, 1], [], []>} : vector<8x128xbf16>, vector<128x128xbf16>, vector<8x128xf32> -> vector<8x128xf32>
    %cst_23 = arith.constant dense<0.000000e+00> : vector<8x128xf32>
    %17 = tpu.matmul %7, %13, %cst_23 {dimension_numbers = #tpu.dot_dimension_numbers<[1], [0], [0], [1], [0, 0, 1, 1], [], []>} : vector<8x128xbf16>, vector<128x128xbf16>, vector<8x128xf32> -> vector<8x128xf32>
    %c1_24 = arith.constant 1 : index
    %c0_25 = arith.constant 0 : index
    %c0_26 = arith.constant 0 : index
    %18 = vector.load %arg2[%c1_24, %c0_25, %c0_26] : memref<3x128x128xbf16, #tpu.memory_space<vmem>>, vector<1x128x128xbf16>
    %19 = vector.shape_cast %18 : vector<1x128x128xbf16> to vector<128x128xbf16>
    %cst_27 = arith.constant dense<0.000000e+00> : vector<8x128xf32>
    %20 = tpu.matmul %3, %19, %cst_27 {dimension_numbers = #tpu.dot_dimension_numbers<[1], [0], [0], [1], [0, 0, 1, 1], [], []>} : vector<8x128xbf16>, vector<128x128xbf16>, vector<8x128xf32> -> vector<8x128xf32>
    %21 = arith.addf %14, %20 : vector<8x128xf32>
    %cst_28 = arith.constant dense<0.000000e+00> : vector<8x128xf32>
    %22 = tpu.matmul %5, %19, %cst_28 {dimension_numbers = #tpu.dot_dimension_numbers<[1], [0], [0], [1], [0, 0, 1, 1], [], []>} : vector<8x128xbf16>, vector<128x128xbf16>, vector<8x128xf32> -> vector<8x128xf32>
    %23 = arith.addf %15, %22 : vector<8x128xf32>
    %cst_29 = arith.constant dense<0.000000e+00> : vector<8x128xf32>
    %24 = tpu.matmul %7, %19, %cst_29 {dimension_numbers = #tpu.dot_dimension_numbers<[1], [0], [0], [1], [0, 0, 1, 1], [], []>} : vector<8x128xbf16>, vector<128x128xbf16>, vector<8x128xf32> -> vector<8x128xf32>
    %25 = arith.addf %16, %24 : vector<8x128xf32>
    %cst_30 = arith.constant dense<0.000000e+00> : vector<8x128xf32>
    %26 = tpu.matmul %9, %19, %cst_30 {dimension_numbers = #tpu.dot_dimension_numbers<[1], [0], [0], [1], [0, 0, 1, 1], [], []>} : vector<8x128xbf16>, vector<128x128xbf16>, vector<8x128xf32> -> vector<8x128xf32>
    %27 = arith.addf %17, %26 : vector<8x128xf32>
    %c2_31 = arith.constant 2 : index
    %c0_32 = arith.constant 0 : index
    %c0_33 = arith.constant 0 : index
    %28 = vector.load %arg2[%c2_31, %c0_32, %c0_33] : memref<3x128x128xbf16, #tpu.memory_space<vmem>>, vector<1x128x128xbf16>
    %29 = vector.shape_cast %28 : vector<1x128x128xbf16> to vector<128x128xbf16>
    %cst_34 = arith.constant dense<0.000000e+00> : vector<8x128xf32>
    %30 = tpu.matmul %5, %29, %cst_34 {dimension_numbers = #tpu.dot_dimension_numbers<[1], [0], [0], [1], [0, 0, 1, 1], [], []>} : vector<8x128xbf16>, vector<128x128xbf16>, vector<8x128xf32> -> vector<8x128xf32>
    %31 = arith.addf %21, %30 : vector<8x128xf32>
    %cst_35 = arith.constant dense<0.000000e+00> : vector<8x128xf32>
    %32 = tpu.matmul %7, %29, %cst_35 {dimension_numbers = #tpu.dot_dimension_numbers<[1], [0], [0], [1], [0, 0, 1, 1], [], []>} : vector<8x128xbf16>, vector<128x128xbf16>, vector<8x128xf32> -> vector<8x128xf32>
    %33 = arith.addf %23, %32 : vector<8x128xf32>
    %cst_36 = arith.constant dense<0.000000e+00> : vector<8x128xf32>
    %34 = tpu.matmul %9, %29, %cst_36 {dimension_numbers = #tpu.dot_dimension_numbers<[1], [0], [0], [1], [0, 0, 1, 1], [], []>} : vector<8x128xbf16>, vector<128x128xbf16>, vector<8x128xf32> -> vector<8x128xf32>
    %35 = arith.addf %25, %34 : vector<8x128xf32>
    %cst_37 = arith.constant dense<0.000000e+00> : vector<8x128xf32>
    %36 = tpu.matmul %11, %29, %cst_37 {dimension_numbers = #tpu.dot_dimension_numbers<[1], [0], [0], [1], [0, 0, 1, 1], [], []>} : vector<8x128xbf16>, vector<128x128xbf16>, vector<8x128xf32> -> vector<8x128xf32>
    %37 = arith.addf %27, %36 : vector<8x128xf32>
    %38 = arith.maximumf %31, %33 : vector<8x128xf32>
    %cst_38 = arith.constant 0.000000e+00 : f32
    %39 = vector.broadcast %cst_38 : f32 to vector<8x128xf32>
    %40 = arith.maximumf %38, %39 : vector<8x128xf32>
    %41 = vector.extract_strided_slice %40 {offsets = [0, 0], sizes = [8, 64], strides = [1, 1]} : vector<8x128xf32> to vector<8x64xf32>
    %42 = vector.extract_strided_slice %40 {offsets = [0, 64], sizes = [8, 64], strides = [1, 1]} : vector<8x128xf32> to vector<8x64xf32>
    %43 = arith.maximumf %41, %42 : vector<8x64xf32>
    %44 = arith.truncf %43 : vector<8x64xf32> to vector<8x64xbf16>
    %45 = arith.maximumf %35, %37 : vector<8x128xf32>
    %cst_39 = arith.constant 0.000000e+00 : f32
    %46 = vector.broadcast %cst_39 : f32 to vector<8x128xf32>
    %47 = arith.maximumf %45, %46 : vector<8x128xf32>
    %48 = vector.extract_strided_slice %47 {offsets = [0, 0], sizes = [8, 64], strides = [1, 1]} : vector<8x128xf32> to vector<8x64xf32>
    %49 = vector.extract_strided_slice %47 {offsets = [0, 64], sizes = [8, 64], strides = [1, 1]} : vector<8x128xf32> to vector<8x64xf32>
    %50 = arith.maximumf %48, %49 : vector<8x64xf32>
    %51 = arith.truncf %50 : vector<8x64xf32> to vector<8x64xbf16>
    %c0_40 = arith.constant 0 : index
    %c0_41 = arith.constant 0 : index
    %c0_42 = arith.constant 0 : index
    %52 = vector.load %arg3[%c0_40, %c0_41, %c0_42] : memref<3x64x64xbf16, #tpu.memory_space<vmem>>, vector<1x64x64xbf16>
    %53 = vector.shape_cast %52 : vector<1x64x64xbf16> to vector<64x64xbf16>
    %cst_43 = arith.constant dense<0.000000e+00> : vector<8x64xf32>
    %54 = tpu.matmul %44, %53, %cst_43 {dimension_numbers = #tpu.dot_dimension_numbers<[1], [0], [0], [1], [0, 0, 1, 1], [], []>} : vector<8x64xbf16>, vector<64x64xbf16>, vector<8x64xf32> -> vector<8x64xf32>
    %cst_44 = arith.constant dense<0.000000e+00> : vector<8x64xf32>
    %55 = tpu.matmul %51, %53, %cst_44 {dimension_numbers = #tpu.dot_dimension_numbers<[1], [0], [0], [1], [0, 0, 1, 1], [], []>} : vector<8x64xbf16>, vector<64x64xbf16>, vector<8x64xf32> -> vector<8x64xf32>
    %c1_45 = arith.constant 1 : index
    %c0_46 = arith.constant 0 : index
    %c0_47 = arith.constant 0 : index
    %56 = vector.load %arg3[%c1_45, %c0_46, %c0_47] : memref<3x64x64xbf16, #tpu.memory_space<vmem>>, vector<1x64x64xbf16>
    %57 = vector.shape_cast %56 : vector<1x64x64xbf16> to vector<64x64xbf16>
    %cst_48 = arith.constant dense<0.000000e+00> : vector<8x64xf32>
    %58 = tpu.matmul %44, %57, %cst_48 {dimension_numbers = #tpu.dot_dimension_numbers<[1], [0], [0], [1], [0, 0, 1, 1], [], []>} : vector<8x64xbf16>, vector<64x64xbf16>, vector<8x64xf32> -> vector<8x64xf32>
    %cst_49 = arith.constant dense<0.000000e+00> : vector<8x64xf32>
    %59 = tpu.matmul %51, %57, %cst_49 {dimension_numbers = #tpu.dot_dimension_numbers<[1], [0], [0], [1], [0, 0, 1, 1], [], []>} : vector<8x64xbf16>, vector<64x64xbf16>, vector<8x64xf32> -> vector<8x64xf32>
    %60 = arith.addf %54, %59 : vector<8x64xf32>
    %c2_50 = arith.constant 2 : index
    %c0_51 = arith.constant 0 : index
    %c0_52 = arith.constant 0 : index
    %61 = vector.load %arg3[%c2_50, %c0_51, %c0_52] : memref<3x64x64xbf16, #tpu.memory_space<vmem>>, vector<1x64x64xbf16>
    %62 = vector.shape_cast %61 : vector<1x64x64xbf16> to vector<64x64xbf16>
    %cst_53 = arith.constant dense<0.000000e+00> : vector<8x64xf32>
    %63 = tpu.matmul %44, %62, %cst_53 {dimension_numbers = #tpu.dot_dimension_numbers<[1], [0], [0], [1], [0, 0, 1, 1], [], []>} : vector<8x64xbf16>, vector<64x64xbf16>, vector<8x64xf32> -> vector<8x64xf32>
    %cst_54 = arith.constant dense<0.000000e+00> : vector<8x64xf32>
    %64 = tpu.matmul %51, %62, %cst_54 {dimension_numbers = #tpu.dot_dimension_numbers<[1], [0], [0], [1], [0, 0, 1, 1], [], []>} : vector<8x64xbf16>, vector<64x64xbf16>, vector<8x64xf32> -> vector<8x64xf32>
    %65 = arith.addf %58, %64 : vector<8x64xf32>
    %cst_55 = arith.constant 0.000000e+00 : f32
    %66 = vector.broadcast %cst_55 : f32 to vector<2x64xf32>
    %67 = vector.extract_strided_slice %55 {offsets = [0, 0], sizes = [6, 64], strides = [1, 1]} : vector<8x64xf32> to vector<6x64xf32>
    %68 = tpu.concatenate %66, %67 in 0 : vector<2x64xf32>, vector<6x64xf32> -> vector<8x64xf32>
    %69 = arith.addf %65, %68 : vector<8x64xf32>
    %70 = vector.extract_strided_slice %63 {offsets = [2, 0], sizes = [6, 64], strides = [1, 1]} : vector<8x64xf32> to vector<6x64xf32>
    %71 = tpu.concatenate %70, %66 in 0 : vector<6x64xf32>, vector<2x64xf32> -> vector<8x64xf32>
    %72 = arith.addf %60, %71 : vector<8x64xf32>
    %73 = arith.maximumf %69, %72 : vector<8x64xf32>
    %cst_56 = arith.constant 0.000000e+00 : f32
    %74 = vector.broadcast %cst_56 : f32 to vector<8x64xf32>
    %75 = arith.maximumf %73, %74 : vector<8x64xf32>
    %76 = vector.extract_strided_slice %75 {offsets = [0, 0], sizes = [8, 32], strides = [1, 1]} : vector<8x64xf32> to vector<8x32xf32>
    %77 = vector.extract_strided_slice %75 {offsets = [0, 32], sizes = [8, 32], strides = [1, 1]} : vector<8x64xf32> to vector<8x32xf32>
    %78 = arith.maximumf %76, %77 : vector<8x32xf32>
    %79 = arith.truncf %78 : vector<8x32xf32> to vector<8x32xbf16>
    %80 = vector.extract_strided_slice %79 {offsets = [0, 0], sizes = [2, 32], strides = [1, 1]} : vector<8x32xbf16> to vector<2x32xbf16>
    %c0_57 = arith.constant 0 : index
    %c0_58 = arith.constant 0 : index
    %81 = vector.load %arg4[%c0_57, %c0_58] : memref<128x32xbf16, #tpu.memory_space<vmem>>, vector<32x32xbf16>
    %cst_59 = arith.constant dense<0.000000e+00> : vector<2x32xf32>
    %82 = tpu.matmul %80, %81, %cst_59 {dimension_numbers = #tpu.dot_dimension_numbers<[1], [0], [0], [1], [0, 0, 1, 1], [], []>} : vector<2x32xbf16>, vector<32x32xbf16>, vector<2x32xf32> -> vector<2x32xf32>
    %83 = vector.extract_strided_slice %79 {offsets = [2, 0], sizes = [2, 32], strides = [1, 1]} : vector<8x32xbf16> to vector<2x32xbf16>
    %c32 = arith.constant 32 : index
    %c0_60 = arith.constant 0 : index
    %84 = vector.load %arg4[%c32, %c0_60] : memref<128x32xbf16, #tpu.memory_space<vmem>>, vector<32x32xbf16>
    %cst_61 = arith.constant dense<0.000000e+00> : vector<2x32xf32>
    %85 = tpu.matmul %83, %84, %cst_61 {dimension_numbers = #tpu.dot_dimension_numbers<[1], [0], [0], [1], [0, 0, 1, 1], [], []>} : vector<2x32xbf16>, vector<32x32xbf16>, vector<2x32xf32> -> vector<2x32xf32>
    %86 = arith.addf %82, %85 : vector<2x32xf32>
    %87 = vector.extract_strided_slice %79 {offsets = [4, 0], sizes = [2, 32], strides = [1, 1]} : vector<8x32xbf16> to vector<2x32xbf16>
    %c64 = arith.constant 64 : index
    %c0_62 = arith.constant 0 : index
    %88 = vector.load %arg4[%c64, %c0_62] : memref<128x32xbf16, #tpu.memory_space<vmem>>, vector<32x32xbf16>
    %cst_63 = arith.constant dense<0.000000e+00> : vector<2x32xf32>
    %89 = tpu.matmul %87, %88, %cst_63 {dimension_numbers = #tpu.dot_dimension_numbers<[1], [0], [0], [1], [0, 0, 1, 1], [], []>} : vector<2x32xbf16>, vector<32x32xbf16>, vector<2x32xf32> -> vector<2x32xf32>
    %90 = arith.addf %86, %89 : vector<2x32xf32>
    %91 = vector.extract_strided_slice %79 {offsets = [6, 0], sizes = [2, 32], strides = [1, 1]} : vector<8x32xbf16> to vector<2x32xbf16>
    %c96 = arith.constant 96 : index
    %c0_64 = arith.constant 0 : index
    %92 = vector.load %arg4[%c96, %c0_64] : memref<128x32xbf16, #tpu.memory_space<vmem>>, vector<32x32xbf16>
    %cst_65 = arith.constant dense<0.000000e+00> : vector<2x32xf32>
    %93 = tpu.matmul %91, %92, %cst_65 {dimension_numbers = #tpu.dot_dimension_numbers<[1], [0], [0], [1], [0, 0, 1, 1], [], []>} : vector<2x32xbf16>, vector<32x32xbf16>, vector<2x32xf32> -> vector<2x32xf32>
    %94 = arith.addf %90, %93 : vector<2x32xf32>
    %cst_66 = arith.constant 0.000000e+00 : f32
    %95 = vector.broadcast %cst_66 : f32 to vector<2x32xf32>
    %96 = arith.maximumf %94, %95 : vector<2x32xf32>
    %97 = arith.truncf %96 : vector<2x32xf32> to vector<2x32xbf16>
    %c0_67 = arith.constant 0 : index
    %c0_68 = arith.constant 0 : index
    %98 = vector.load %arg5[%c0_67, %c0_68] : memref<32x128xbf16, #tpu.memory_space<vmem>>, vector<32x128xbf16>
    %cst_69 = arith.constant dense<0.000000e+00> : vector<2x128xf32>
    %99 = tpu.matmul %97, %98, %cst_69 {dimension_numbers = #tpu.dot_dimension_numbers<[1], [0], [0], [1], [0, 0, 1, 1], [], []>} : vector<2x32xbf16>, vector<32x128xbf16>, vector<2x128xf32> -> vector<2x128xf32>
    %c0_70 = arith.constant 0 : index
    %c0_71 = arith.constant 0 : index
    %c0_72 = arith.constant 0 : index
    %100 = vector.load %arg6[%c0_70, %c0_71, %c0_72] : memref<1x2x128xf32, #tpu.memory_space<vmem>>, vector<1x2x128xf32>
    %101 = vector.shape_cast %100 : vector<1x2x128xf32> to vector<2x128xf32>
    %102 = vector.shape_cast %99 : vector<2x128xf32> to vector<1x2x128xf32>
    tpu.vector_store %arg6[%c0_70, %c0_71, %c0_72], %102 {strides = array<i32>} : memref<1x2x128xf32, #tpu.memory_space<vmem>>, vector<1x2x128xf32>,
    return
  }
  func.func @transform_0(%arg0: i32) -> (i32, i32, i32, i32) {
    %c0_i32 = arith.constant 0 : i32
    %c0_i32_0 = arith.constant 0 : i32
    %c0_i32_1 = arith.constant 0 : i32
    %c0_i32_2 = arith.constant 0 : i32
    return %arg0, %c0_i32, %c0_i32_0, %c0_i32_1 : i32, i32, i32, i32
  }
  func.func @transform_1(%arg0: i32) -> (i32, i32, i32) {
    %c0_i32 = arith.constant 0 : i32
    %c0_i32_0 = arith.constant 0 : i32
    %c0_i32_1 = arith.constant 0 : i32
    %c0_i32_2 = arith.constant 0 : i32
    return %c0_i32, %c0_i32_0, %c0_i32_1 : i32, i32, i32
  }
  func.func @transform_2(%arg0: i32) -> (i32, i32, i32) {
    %c0_i32 = arith.constant 0 : i32
    %c0_i32_0 = arith.constant 0 : i32
    %c0_i32_1 = arith.constant 0 : i32
    %c0_i32_2 = arith.constant 0 : i32
    return %c0_i32, %c0_i32_0, %c0_i32_1 : i32, i32, i32
  }
  func.func @transform_3(%arg0: i32) -> (i32, i32) {
    %c0_i32 = arith.constant 0 : i32
    %c0_i32_0 = arith.constant 0 : i32
    %c0_i32_1 = arith.constant 0 : i32
    return %c0_i32, %c0_i32_0 : i32, i32
  }
  func.func @transform_4(%arg0: i32) -> (i32, i32) {
    %c0_i32 = arith.constant 0 : i32
    %c0_i32_0 = arith.constant 0 : i32
    %c0_i32_1 = arith.constant 0 : i32
    return %c0_i32, %c0_i32_0 : i32, i32
  }
  func.func @transform_5(%arg0: i32) -> (i32, i32, i32) {
    %c0_i32 = arith.constant 0 : i32
    %c0_i32_0 = arith.constant 0 : i32
    %c0_i32_1 = arith.constant 0 : i32
    return %arg0, %c0_i32, %c0_i32_0 : i32, i32, i32
  }
}

</mosaic_0001>

<bundles_post_ra>
// kernel: _forward.1
= control target key start
LH: loop header
LB: loop body
LE: loop exit
PB: predicated region body
PF: predicated region fallthrough
CT: control target
= control target key end

     0   :  { %s1319_s0 = inlined_call_operand.vmem [shape: bf16[1,6,8,128], index: 0, kind: input, shape index: {}]   ;;  %s1320_s1 = inlined_call_operand.vmem [shape: bf16[3,128,128], index: 1, kind: input, shape index: {}]   ;;  %s1321_s2 = inlined_call_operand.vmem [shape: bf16[3,64,64], index: 2, kind: input, shape index: {}]   ;;  %s1322_s3 = inlined_call_operand.vmem [shape: bf16[128,32], index: 3, kind: input, shape index: {}]   ;;  %s1323_s4 = inlined_call_operand.vmem [shape: bf16[32,128], index: 4, kind: input, shape index: {}]   ;;  %s1324_s5 = inlined_call_operand.hbm [shape: f32[1,2,128], index: 5, kind: output, shape index: {}]  }
   0x1   :  { %v1057_v0 = vld [vmem:[%s1320_s1 + $0x78] sm:$0xff]  ;;  %v1056_v2 = vld [vmem:[%s1320_s1 + $0x70] sm:$0xff] }
   0x2   :  { %v1049_v1 = vld [vmem:[%s1320_s1 + $0x38] sm:$0xff]  ;;  %114 = vmatpush.bf16.msra.mxu0 %v1057_v0  ;;  %v1048_v3 = vld [vmem:[%s1320_s1 + $0x30] sm:$0xff]  ;;  %188 = vmatpush.bf16.msra.mxu2 %v1057_v0 }
   0x3   :  { %175 = vmatpush.bf16.msra.mxu1 %v1049_v1  ;;  %201 = vmatpush.bf16.msra.mxu3 %v1049_v1 }
   0x4   :  { %10 = vsyncpa [#allocation3], 0  ;;  %v1055_v4 = vld [vmem:[%s1320_s1 + $0x68] sm:$0xff]  ;;  %v1054_v6 = vld [vmem:[%s1320_s1 + $0x60] sm:$0xff]  ;;  %s1117_s15 = smov 64   ;;  %vm435_vm0 = vcmask 523264  }
   0x5   :  { %v1047_v5 = vld [vmem:[%s1320_s1 + $0x28] sm:$0xff]  ;;  %v1046_v7 = vld [vmem:[%s1320_s1 + $0x20] sm:$0xff]  ;;  %v1053_v8 = vld [vmem:[%s1320_s1 + $0x58] sm:$0xff]  ;;  %vm595_vm1 = vcmask 1045504   ;;  %vm589_vm2 = vcmask 1041408   ;;  %vm630_vm3 = vcmask 261120  }
   0x6   :  { %115 = vmatpush.bf16.msra.mxu0 %v1056_v2  ;;  %189 = vmatpush.bf16.msra.mxu2 %v1056_v2  ;;  %v1045_v9 = vld [vmem:[%s1320_s1 + $0x18] sm:$0xff]  ;;  %v1052_v10 = vld [vmem:[%s1320_s1 + $0x50] sm:$0xff]  ;;  %v1051_v12 = vld [vmem:[%s1320_s1 + $0x48] sm:$0xff]  ;;  %s1119_s18 = smov [#allocation2]   ;;  %s785_s21 = sshll.u32 %s1324_s5, 4  ;;  %s786_s21 = int_to_ptr.hbm [resolvable:$true] %s785_s21 }
   0x7   :  { %176 = vmatpush.bf16.msra.mxu1 %v1048_v3  ;;  %202 = vmatpush.bf16.msra.mxu3 %v1048_v3  ;;  %v1044_v11 = vld [vmem:[%s1320_s1 + $0x10] sm:$0xff]  ;;  %v1043_v13 = vld [vmem:[%s1320_s1 + $0x8] sm:$0xff]  ;;  %v1050_v14 = vld [vmem:[%s1320_s1 + $0x40] sm:$0xff]  ;;  %s783_s19 = sshll.u32 %s1119_s18, 4  ;;  %s784_s19 = int_to_ptr.vmem [resolvable:$true] %s783_s19 }
   0x8   :  { %v1042_v15 = vld [vmem:[%s1320_s1] sm:$0xff]  ;;  %v1201_v16 = vld [vmem:[%s1319_s0 + $0x8] sm:$0xf]  ;;  %v1065_v19 = vld [vmem:[%s1320_s1 + $0xb8] sm:$0xff] }
   0x9   :  { %v794_v17 = vld [vmem:[%s1319_s0 + $0x4] sm:$0xf]  ;;  %v22_v18 = vld [vmem:[%s1319_s0] sm:$0xf]  ;;  %v797_v20 = vld [vmem:[%s1319_s0 + $0x10] sm:$0xf] }
   0xa   :  { %116 = vmatpush.bf16.msra.mxu0 %v1055_v4  ;;  %190 = vmatpush.bf16.msra.mxu2 %v1055_v4  ;;  %v796_v21 = vld [vmem:[%s1319_s0 + $0xc] sm:$0xf]  ;;  %v1064_v22 = vld [vmem:[%s1320_s1 + $0xb0] sm:$0xff]  ;;  %v1062_v24 = vld [vmem:[%s1320_s1 + $0xa0] sm:$0xff] }
   0xb   :  { %177 = vmatpush.bf16.msra.mxu1 %v1047_v5  ;;  %203 = vmatpush.bf16.msra.mxu3 %v1047_v5  ;;  %v1063_v23 = vld [vmem:[%s1320_s1 + $0xa8] sm:$0xff]  ;;  %v1061_v25 = vld [vmem:[%s1320_s1 + $0x98] sm:$0xff]  ;;  %v1060_v26 = vld [vmem:[%s1320_s1 + $0x90] sm:$0xff] }
   0xc   :  { %v1059_v27 = vld [vmem:[%s1320_s1 + $0x88] sm:$0xff]  ;;  %v1058_v28 = vld [vmem:[%s1320_s1 + $0x80] sm:$0xff]  ;;  %v798_v29 = vld [vmem:[%s1319_s0 + $0x14] sm:$0xf]  ;;  %s1118_s1 = smov 96  }
   0xd   :  { %v1069_v48 = vld [vmem:[%s1321_s2 + $0x18] sm:$0xff]  ;;  %v1068_v50 = vld [vmem:[%s1321_s2 + $0x10] sm:$0xff]  ;;  %v1067_v53 = vld [vmem:[%s1321_s2 + $0x8] sm:$0xff] }
   0xe   :  { %117 = vmatpush.bf16.msra.mxu0 %v1054_v6  ;;  %191 = vmatpush.bf16.msra.mxu2 %v1054_v6  ;;  %v1073_v49 = vld [vmem:[%s1321_s2 + $0x38] sm:$0xff]  ;;  %v1072_v51 = vld [vmem:[%s1321_s2 + $0x30] sm:$0xff]  ;;  %v1071_v54 = vld [vmem:[%s1321_s2 + $0x28] sm:$0xff] }
   0xf   :  { %178 = vmatpush.bf16.msra.mxu1 %v1046_v7  ;;  %204 = vmatpush.bf16.msra.mxu3 %v1046_v7  ;;  %v1077_v52 = vld [vmem:[%s1321_s2 + $0x58] sm:$0xff] }
  0x12   :  { %118 = vmatpush.bf16.msra.mxu0 %v1053_v8  ;;  %192 = vmatpush.bf16.msra.mxu2 %v1053_v8 }
  0x13   :  { %179 = vmatpush.bf16.msra.mxu1 %v1045_v9  ;;  %205 = vmatpush.bf16.msra.mxu3 %v1045_v9 }
  0x16   :  { %119 = vmatpush.bf16.msra.mxu0 %v1052_v10  ;;  %193 = vmatpush.bf16.msra.mxu2 %v1052_v10 }
  0x17   :  { %180 = vmatpush.bf16.msra.mxu1 %v1044_v11  ;;  %206 = vmatpush.bf16.msra.mxu3 %v1044_v11 }
  0x1a   :  { %120 = vmatpush.bf16.msra.mxu0 %v1051_v12  ;;  %194 = vmatpush.bf16.msra.mxu2 %v1051_v12 }
  0x1b   :  { %181 = vmatpush.bf16.msra.mxu1 %v1043_v13  ;;  %207 = vmatpush.bf16.msra.mxu3 %v1043_v13 }
  0x1e   :  { %121 = vmatpush.bf16.msra.mxu0 %v1050_v14  ;;  %195 = vmatpush.bf16.msra.mxu2 %v1050_v14 }
  0x1f   :  { %182 = vmatpush.bf16.msra.mxu1 %v1042_v15  ;;  %208 = vmatpush.bf16.msra.mxu3 %v1042_v15 }
  0x21   :  { %196 = vmatmul.bf16.vlgmr.msra.gmra.mxu2 %v1201_v16  ;;  %122 = vmatmul.bf16.vlgmr.msra.gmra.mxu0 %v794_v17 }
  0x22   :  { %214 = vmatpush.bf16.msrb.mxu0 %v1057_v0  ;;  %240 = vmatpush.bf16.msrb.mxu2 %v1057_v0 }
  0x23   :  { %227 = vmatpush.bf16.msrb.mxu1 %v1049_v1  ;;  %253 = vmatpush.bf16.msrb.mxu3 %v1049_v1 }
  0x24   :  { %209 = vmatmul.bf16.vlgmr.msra.gmra.mxu3 %v794_v17  ;;  %183 = vmatmul.bf16.vlgmr.msra.gmra.mxu1 %v22_v18 }
  0x26   :  { %215 = vmatpush.bf16.msrb.mxu0 %v1056_v2  ;;  %241 = vmatpush.bf16.msrb.mxu2 %v1056_v2 }
  0x27   :  { %228 = vmatpush.bf16.msrb.mxu1 %v1048_v3  ;;  %254 = vmatpush.bf16.msrb.mxu3 %v1048_v3 }
  0x2a   :  { %216 = vmatpush.bf16.msrb.mxu0 %v1055_v4  ;;  %242 = vmatpush.bf16.msrb.mxu2 %v1055_v4 }
  0x2b   :  { %229 = vmatpush.bf16.msrb.mxu1 %v1047_v5  ;;  %255 = vmatpush.bf16.msrb.mxu3 %v1047_v5 }
  0x2e   :  { %217 = vmatpush.bf16.msrb.mxu0 %v1054_v6  ;;  %243 = vmatpush.bf16.msrb.mxu2 %v1054_v6 }
  0x2f   :  { %230 = vmatpush.bf16.msrb.mxu1 %v1046_v7  ;;  %256 = vmatpush.bf16.msrb.mxu3 %v1046_v7 }
  0x32   :  { %218 = vmatpush.bf16.msrb.mxu0 %v1053_v8  ;;  %244 = vmatpush.bf16.msrb.mxu2 %v1053_v8 }
  0x33   :  { %231 = vmatpush.bf16.msrb.mxu1 %v1045_v9  ;;  %257 = vmatpush.bf16.msrb.mxu3 %v1045_v9  ;;  %v1066_v9 = vld [vmem:[%s1321_s2] sm:$0xff] }
  0x36   :  { %219 = vmatpush.bf16.msrb.mxu0 %v1052_v10  ;;  %245 = vmatpush.bf16.msrb.mxu2 %v1052_v10  ;;  %v1070_v10 = vld [vmem:[%s1321_s2 + $0x20] sm:$0xff] }
  0x37   :  { %232 = vmatpush.bf16.msrb.mxu1 %v1044_v11  ;;  %258 = vmatpush.bf16.msrb.mxu3 %v1044_v11  ;;  %v1076_v11 = vld [vmem:[%s1321_s2 + $0x50] sm:$0xff] }
  0x3a   :  { %220 = vmatpush.bf16.msrb.mxu0 %v1051_v12  ;;  %246 = vmatpush.bf16.msrb.mxu2 %v1051_v12  ;;  %v1075_v12 = vld [vmem:[%s1321_s2 + $0x48] sm:$0xff] }
  0x3b   :  { %233 = vmatpush.bf16.msrb.mxu1 %v1043_v13  ;;  %259 = vmatpush.bf16.msrb.mxu3 %v1043_v13  ;;  %v1074_v13 = vld [vmem:[%s1321_s2 + $0x40] sm:$0xff] }
  0x3e   :  { %221 = vmatpush.bf16.msrb.mxu0 %v1050_v14  ;;  %247 = vmatpush.bf16.msrb.mxu2 %v1050_v14 }
  0x3f   :  { %234 = vmatpush.bf16.msrb.mxu1 %v1042_v15  ;;  %260 = vmatpush.bf16.msrb.mxu3 %v1042_v15 }
  0x41   :  { %248 = vmatmul.bf16.vlgmr.msrb.gmra.mxu2 %v797_v20  ;;  %222 = vmatmul.bf16.vlgmr.msrb.gmra.mxu0 %v796_v21 }
  0x42   :  { %331 = vmatpush.bf16.msra.mxu0 %v1065_v19  ;;  %359 = vmatpush.bf16.msra.mxu2 %v1065_v19 }
  0x43   :  { %345 = vmatpush.bf16.msra.mxu1 %v1065_v19  ;;  %373 = vmatpush.bf16.msra.mxu3 %v1065_v19 }
  0x44   :  { %261 = vmatmul.bf16.vlgmr.msrb.gmra.mxu3 %v796_v21  ;;  %235 = vmatmul.bf16.vlgmr.msrb.gmra.mxu1 %v1201_v16 }
  0x46   :  { %332 = vmatpush.bf16.msra.mxu0 %v1064_v22  ;;  %360 = vmatpush.bf16.msra.mxu2 %v1064_v22 }
  0x47   :  { %346 = vmatpush.bf16.msra.mxu1 %v1064_v22  ;;  %374 = vmatpush.bf16.msra.mxu3 %v1064_v22 }
  0x4a   :  { %333 = vmatpush.bf16.msra.mxu0 %v1063_v23  ;;  %361 = vmatpush.bf16.msra.mxu2 %v1063_v23 }
  0x4b   :  { %347 = vmatpush.bf16.msra.mxu1 %v1063_v23  ;;  %375 = vmatpush.bf16.msra.mxu3 %v1063_v23 }
  0x4e   :  { %334 = vmatpush.bf16.msra.mxu0 %v1062_v24  ;;  %362 = vmatpush.bf16.msra.mxu2 %v1062_v24 }
  0x4f   :  { %348 = vmatpush.bf16.msra.mxu1 %v1062_v24  ;;  %376 = vmatpush.bf16.msra.mxu3 %v1062_v24 }
  0x52   :  { %335 = vmatpush.bf16.msra.mxu0 %v1061_v25  ;;  %363 = vmatpush.bf16.msra.mxu2 %v1061_v25 }
  0x53   :  { %349 = vmatpush.bf16.msra.mxu1 %v1061_v25  ;;  %377 = vmatpush.bf16.msra.mxu3 %v1061_v25 }
  0x56   :  { %336 = vmatpush.bf16.msra.mxu0 %v1060_v26  ;;  %364 = vmatpush.bf16.msra.mxu2 %v1060_v26 }
  0x57   :  { %350 = vmatpush.bf16.msra.mxu1 %v1060_v26  ;;  %378 = vmatpush.bf16.msra.mxu3 %v1060_v26 }
  0x5a   :  { %337 = vmatpush.bf16.msra.mxu0 %v1059_v27  ;;  %365 = vmatpush.bf16.msra.mxu2 %v1059_v27 }
  0x5b   :  { %351 = vmatpush.bf16.msra.mxu1 %v1059_v27  ;;  %379 = vmatpush.bf16.msra.mxu3 %v1059_v27 }
  0x5e   :  { %338 = vmatpush.bf16.msra.mxu0 %v1058_v28  ;;  %366 = vmatpush.bf16.msra.mxu2 %v1058_v28 }
  0x5f   :  { %352 = vmatpush.bf16.msra.mxu1 %v1058_v28  ;;  %380 = vmatpush.bf16.msra.mxu3 %v1058_v28 }
  0x61   :  { %339 = vmatmul.bf16.vlgmr.msra.gmra.mxu0 %v1201_v16  ;;  %367 = vmatmul.bf16.vlgmr.msra.gmra.mxu2 %v797_v20  ;;  %v1081_v20 = vld [vmem:[%s1322_s3 + $0x18] sm:$0xff] }
  0x62   :  { %353 = vmatmul.bf16.vlgmr.msra.gmra.mxu1 %v796_v21  ;;  %381 = vmatmul.bf16.vlgmr.msra.gmra.mxu3 %v798_v29  ;;  %v1079_v21 = vld [vmem:[%s1322_s3 + $0x8] sm:$0xff] }
  0x63   :  { %443 = vmatpush.bf16.msrb.mxu0 %v1069_v48  ;;  %489 = vmatpush.bf16.msrb.mxu1 %v1073_v49 }
  0x64   :  { %505 = vmatpush.bf16.msrb.mxu2 %v1069_v48  ;;  %551 = vmatpush.bf16.msrb.mxu3 %v1077_v52  ;;  %v1082_v48 = vld [vmem:[%s1322_s3 + $0x20] sm:$0xff] }
  0x67   :  { %444 = vmatpush.bf16.msrb.mxu0 %v1068_v50  ;;  %490 = vmatpush.bf16.msrb.mxu1 %v1072_v51 }
  0x68   :  { %506 = vmatpush.bf16.msrb.mxu2 %v1068_v50  ;;  %552 = vmatpush.bf16.msrb.mxu3 %v1076_v11 }
  0x6b   :  { %445 = vmatpush.bf16.msrb.mxu0 %v1067_v53  ;;  %491 = vmatpush.bf16.msrb.mxu1 %v1071_v54 }
  0x6c   :  { %507 = vmatpush.bf16.msrb.mxu2 %v1067_v53  ;;  %553 = vmatpush.bf16.msrb.mxu3 %v1075_v12 }
  0x6f   :  { %446 = vmatpush.bf16.msrb.mxu0 %v1066_v9  ;;  %492 = vmatpush.bf16.msrb.mxu1 %v1070_v10 }
  0x70   :  { %508 = vmatpush.bf16.msrb.mxu2 %v1066_v9  ;;  %554 = vmatpush.bf16.msrb.mxu3 %v1074_v13 }
  0x73   :  { %564 = vmatpush.bf16.msra.mxu0 %v1077_v52  ;;  %577 = vmatpush.bf16.msra.mxu1 %v1073_v49  ;;  %v1084_v49 = vld [vmem:[%s1322_s3 + $0x30] sm:$0xff] }
  0x74   :  { %640 = vmatpush.bf16.msra.mxu2 %v1081_v20  ;;  %668 = vmatpush.bf16.msra.mxu3 %v1079_v21 }
  0x77   :  { %565 = vmatpush.bf16.msra.mxu0 %v1076_v11  ;;  %578 = vmatpush.bf16.msra.mxu1 %v1072_v51 }
  0x7b   :  { %566 = vmatpush.bf16.msra.mxu0 %v1075_v12  ;;  %579 = vmatpush.bf16.msra.mxu1 %v1071_v54 }
  0x7f   :  { %567 = vmatpush.bf16.msra.mxu0 %v1074_v13  ;;  %580 = vmatpush.bf16.msra.mxu1 %v1070_v10 }
  0x9e   :  { %v123_v30 = vpop.f32.mrf.mxu0 }
  0xa1   :  { %v184_v31 = vpop.f32.mrf.mxu1 }
  0xa2   :  { %v185_v32 = vadd.f32 %v184_v31, %v123_v30 }
  0xa4   :  { %v197_v33 = vpop.f32.mrf.mxu2 }
  0xa6   :  { %v125_v36 = vpop.f32.mrf.mxu0 }
  0xa7   :  { %v210_v34 = vpop.f32.mrf.mxu3 }
  0xa8   :  { %v211_v35 = vadd.f32 %v210_v34, %v197_v33 }
  0xa9   :  { %v186_v37 = vpop.f32.mrf.mxu1 }
  0xac   :  { %v199_v38 = vpop.f32.mrf.mxu2 }
  0xaf   :  { %v212_v39 = vpop.f32.mrf.mxu3 }
  0xbe   :  { %v223_v40 = vpop.f32.mrf.mxu0 }
  0xc1   :  { %v236_v41 = vpop.f32.mrf.mxu1 }
  0xc2   :  { %v237_v61 = vadd.f32 %v236_v41, %v223_v40 }
  0xc4   :  { %v249_v42 = vpop.f32.mrf.mxu2 }
  0xc6   :  { %v225_v44 = vpop.f32.mrf.mxu0 }
  0xc7   :  { %v262_v43 = vpop.f32.mrf.mxu3  ;;  %v1078_v44 = vld [vmem:[%s1322_s3] sm:$0xff] }
  0xc8   :  { %v263_v60 = vadd.f32 %v262_v43, %v249_v42  ;;  %669 = vmatpush.bf16.msra.mxu3 %v1078_v44 }
  0xc9   :  { %v238_v45 = vpop.f32.mrf.mxu1 }
  0xca   :  { %v1083_v45 = vld [vmem:[%s1322_s3 + $0x28] sm:$0xff] }
  0xcc   :  { %v251_v46 = vpop.f32.mrf.mxu2 }
  0xcd   :  { %v1085_v46 = vld [vmem:[%s1322_s3 + $0x38] sm:$0xff] }
  0xcf   :  { %v264_v47 = vpop.f32.mrf.mxu3 }
  0xd0   :  { %v1080_v47 = vld [vmem:[%s1322_s3 + $0x10] sm:$0xff] }
  0xd1   :  { %641 = vmatpush.bf16.msra.mxu2 %v1080_v47 }
  0xde   :  { %v340_v55 = vpop.f32.mrf.mxu0 }
  0xdf   :  { %v354_v56 = vpop.f32.mrf.mxu1  ;;  %v344_v57 = vadd.f32 %v340_v55, %v185_v32 }
  0xe0   :  { %v358_v58 = vadd.f32 %v354_v56, %v211_v35 }
  0xe2   :  { %v387_v59 = vmax.f32 %v344_v57, %v358_v58  ;;  %v1087_v58 = vld [vmem:[%s1323_s4 + $0x8] sm:$0xff] }
  0xe4   :  { %v368_v62 = vpop.f32.mrf.mxu2  ;;  %v388_v8 = vmax.f32 %v387_v59, 0.0  ;;  %v1086_v59 = vld [vmem:[%s1323_s4] sm:$0xff] }
  0xe5   :  { %v382_v63 = vpop.f32.mrf.mxu3  ;;  %v372_v0 = vadd.f32 %v368_v62, %v237_v61 }
  0xe6   :  { %v386_v1 = vadd.f32 %v382_v63, %v263_v60  ;;  %v342_v2 = vpop.f32.mrf.mxu0 }
  0xe7   :  { %v356_v3 = vpop.f32.mrf.mxu1 }
  0xe8   :  { %v395_v4 = vmax.f32 %v372_v0, %v386_v1 }
  0xea   :  { %v396_v5 = vmax.f32 %v395_v4, 0.0 }
  0xec   :  { %398 = vrot.lane.b32.xlu0 %v396_v5, %s1117_s15  ;;  %v370_v6 = vpop.f32.mrf.mxu2 }
  0xed   :  { %v384_v7 = vpop.f32.mrf.mxu3 }
  0xf4   :  { %390 = vrot.lane.b32.xlu0 %v388_v8, %s1117_s15 }
 0x15e   :  { %v399_v14 = vpop.permute.xlu0 %398 }
 0x15f   :  { %v401_v15 = vmax.f32 %v396_v5, %v399_v14 }
 0x161   :  { %v402_v16 = vpack.c.bf16 %v401_v15, %v401_v15 }
 0x163   :  { %943 = vmatmul.msk.bf16.vlgmr.msrb.gmra.mxu0 %vm435_vm0, %v402_v16  ;;  %968 = vmatmul.msk.bf16.vlgmr.msrb.gmra.mxu1 %vm435_vm0, %v402_v16 }
 0x164   :  { %701 = vmatpush.bf16.msrb.mxu0 %v1083_v45  ;;  %735 = vmatpush.bf16.msrb.mxu1 %v1085_v46 }
 0x166   :  { %v391_v17 = vpop.permute.xlu0 %390 }
 0x167   :  { %v393_v18 = vmax.f32 %v388_v8, %v391_v17 }
 0x168   :  { %702 = vmatpush.bf16.msrb.mxu0 %v1082_v48  ;;  %736 = vmatpush.bf16.msrb.mxu1 %v1084_v49 }
 0x169   :  { %v394_v19 = vpack.c.bf16 %v393_v18, %v393_v18 }
 0x16b   :  { %969 = vmatmul.msk.bf16.vlgmr.msrb.gmra.mxu2 %vm435_vm0, %v394_v19  ;;  %994 = vmatmul.msk.bf16.vlgmr.msrb.gmra.mxu3 %vm435_vm0, %v394_v19 }
 0x16c   :  { %770 = vmatpush.bf16.msrb.mxu2 %v1087_v58 }
 0x170   :  { %771 = vmatpush.bf16.msrb.mxu2 %v1086_v59 }
 0x173   :  { %995 = vmatmul.msk.bf16.vlgmr.msra.gmra.mxu0 %vm435_vm0, %v402_v16  ;;  %996 = vmatmul.msk.bf16.vlgmr.msra.gmra.mxu1 %vm435_vm0, %v394_v19 }
 0x1e0   :  { %v448_v22 = vpop.f32.mrf.mxu0  ;;  %v494_v23 = vpop.f32.mrf.mxu1 }
 0x1e1   :  { %v587_v26 = vrot.slane %v448_v22, 6 }
 0x1e3   :  { %v590_v35 = vsel %vm589_vm2, 0.0, %v587_v26 }
 0x1e8   :  { %v450_v24 = vpop.f32.mrf.mxu0  ;;  %v496_v25 = vpop.f32.mrf.mxu1 }
 0x1ee   :  { %v510_v27 = vpop.f32.mrf.mxu2  ;;  %v556_v28 = vpop.f32.mrf.mxu3 }
 0x1ef   :  { %v511_v29 = vadd.f32 %v510_v27, %v494_v23  ;;  %v593_v30 = vrot.slane %v556_v28, 2 }
 0x1f0   :  { %v569_v31 = vpop.f32.mrf.mxu0  ;;  %v582_v32 = vpop.f32.mrf.mxu1 }
 0x1f1   :  { %v596_v33 = vsel %vm595_vm1, %v593_v30, 0.0  ;;  %v583_v34 = vadd.f32 %v582_v32, %v569_v31 }
 0x1f2   :  { %v597_v36 = vadd.f32 %v596_v33, %v511_v29 }
 0x1f3   :  { %v591_v37 = vadd.f32 %v590_v35, %v583_v34 }
 0x1f5   :  { %v598_v38 = vmax.f32 %v591_v37, %v597_v36 }
 0x1f6   :  { %v512_v39 = vpop.f32.mrf.mxu2  ;;  %v558_v40 = vpop.f32.mrf.mxu3 }
 0x1f7   :  { %v599_v41 = vmax.f32 %v598_v38, 0.0 }
 0x1f8   :  { %v571_v42 = vpop.f32.mrf.mxu0  ;;  %v584_v43 = vpop.f32.mrf.mxu1 }
 0x1f9   :  { %601 = vrot.lane.b32.xlu1 %v599_v41, %s1118_s1 }
 0x26b   :  { %v602_v50 = vpop.permute.xlu1 %601 }
 0x26c   :  { %v604_v51 = vmax.f32 %v599_v41, %v602_v50 }
 0x26e   :  { %v605_v52 = vpack.c.bf16 %v604_v51, %v604_v51 }
 0x270   :  { %v615_v53 = vunpack.c.l.b16 %v605_v52  ;;  %1014 = vmatmul.msk.bf16.vlgmr.msra.gmra.mxu3 %vm630_vm3, %v605_v52 }
 0x272   :  { %v616_v54 = vpack.c.b16 %v615_v53, %v615_v53 }
 0x274   :  { %v617_v55 = vrot.slane %v616_v54, 1  ;;  %v679_v56 = vrot.slane %v616_v54, 2  ;;  %v713_v57 = vrot.slane %v616_v54, 3 }
 0x276   :  { %1005 = vmatmul.msk.bf16.vlgmr.msra.gmra.mxu2 %vm630_vm3, %v617_v55  ;;  %1023 = vmatmul.msk.bf16.vlgmr.msrb.gmra.mxu0 %vm630_vm3, %v679_v56 }
 0x277   :  { %1032 = vmatmul.msk.bf16.vlgmr.msrb.gmra.mxu1 %vm630_vm3, %v713_v57 }
 0x2f3   :  { %v671_v60 = vpop.f32.mrf.mxu3  ;;  %v704_v61 = vpop.f32.mrf.mxu0 }
 0x2f4   :  { %v738_v62 = vpop.f32.mrf.mxu1 }
 0x2f9   :  { %v643_v63 = vpop.f32.mrf.mxu2 }
 0x2fa   :  { %v672_v0 = vadd.f32 %v671_v60, %v643_v63 }
 0x2fb   :  { %v673_v1 = vpop.f32.mrf.mxu3  ;;  %v706_v2 = vpop.f32.mrf.mxu0 }
 0x2fc   :  { %v708_v3 = vadd.f32 %v704_v61, %v672_v0  ;;  %v740_v4 = vpop.f32.mrf.mxu1 }
 0x2fe   :  { %v742_v5 = vadd.f32 %v738_v62, %v708_v3 }
 0x300   :  { %v743_v6 = vmax.f32 %v742_v5, 0.0 }
 0x301   :  { %v645_v7 = vpop.f32.mrf.mxu2 }
 0x302   :  { %v744_v8 = vpack.c.bf16 %v743_v6, %v743_v6 }
 0x304   :  { %1041 = vmatmul.msk.bf16.vlgmr.msrb.gmra.mxu2 %vm630_vm3, %v744_v8 }
 0x387   :  { %v773_v9 = vpop.f32.mrf.mxu2 }
 0x388   :  { %777 = vst [vmem:[#allocation2] sm:$0x3] %v773_v9 }
 0x389   :  { %788 = dma.vmem_to_hbm [thread:$0]  %s784_s19, 32, %s786_s21, [#allocation3]  }
 0x38f   :  { %v775_v10 = vpop.f32.mrf.mxu2 }
 0x390   :  { %1115 = dma.done.wait [#allocation3], 32  }
 0x391   :  { %1116 = vsyncadd [#allocation3], 4294967264 }
 0x392   :  { %793 = vsyncpa [#allocation3], 1 }

</bundles_post_ra>
